<compile_context>
chip_gen: v7x
topology: tpu7x:2x2x1
jax: 0.10.0
libtpu: 0.0.40
codegen_flags: <defaults>
</compile_context>

<pallas_src>
import functools

import jax
import jax.numpy as jnp
from jax.experimental import pallas as pl
from jax.experimental.pallas import tpu as pltpu

EPS = 1e-5                                # nn.LayerNorm default eps
_TARGET_TILE_BYTES = 4 * 1024 * 1024      # per-stream tile target (HBM roofline knee)


def _skip_ln_kernel(x_ref, z_ref, gamma_ref, beta_ref, o_ref):
    """Generic path: one tile row == one LayerNorm row (lane width == D >= 128)."""
    s = x_ref[...].astype(jnp.float32) + z_ref[...].astype(jnp.float32)
    inv_d = 1.0 / s.shape[-1]
    # Two-pass (shifted) statistics: immune to the E[s^2]-E[s]^2 cancellation
    # when |mean| >> std; the extra VPU pass is free in this HBM-bound kernel.
    mean = jnp.sum(s, axis=-1, keepdims=True) * inv_d
    c = s - mean
    var = jnp.sum(c * c, axis=-1, keepdims=True) * inv_d
    inv = jax.lax.rsqrt(var + EPS)
    o_ref[...] = (c * inv * gamma_ref[...] + beta_ref[...]).astype(o_ref.dtype)


def _skip_ln_packed_kernel(x_ref, z_ref, gamma_ref, beta_ref, ered_ref, ebc_ref,
                           o_ref, *, d):
    """Packed path: `pack` logical rows (width d, lane-padded to d_pad) share one
    128-lane row. Per-row sums use one-hot segment matmuls on the MXU so the VPU
    work and all loads/stores stay 128-lane dense. e_red masks out the padded
    lanes so statistics are over exactly d valid elements (two-pass form)."""
    s = x_ref[...].astype(jnp.float32) + z_ref[...].astype(jnp.float32)
    e_red = ered_ref[...]                   # (128, p_pad) one-hot, valid lanes only
    e_bc = ebc_ref[...]                     # (p_pad, 128) one-hot, full segments
    hi = jax.lax.Precision.HIGHEST
    inv_d = 1.0 / d
    mean = jnp.dot(s, e_red, precision=hi,
                   preferred_element_type=jnp.float32) * inv_d        # (tm, p_pad)
    mean_f = jnp.dot(mean, e_bc, precision=hi,
                     preferred_element_type=jnp.float32)              # (tm, 128)
    c = s - mean_f
    var = jnp.dot(c * c, e_red, precision=hi,
                  preferred_element_type=jnp.float32) * inv_d         # (tm, p_pad)
    inv = jax.lax.rsqrt(var + EPS)
    inv_f = jnp.dot(inv, e_bc, precision=hi,
                    preferred_element_type=jnp.float32)               # (tm, 128)
    o_ref[...] = (c * inv_f * gamma_ref[...] + beta_ref[...]).astype(o_ref.dtype)


def _sublane_multiple(itemsize):
    """Native sublane packing of the I/O dtype: 8 for f32, 16 for bf16, 32 for i8."""
    return max(8, 32 // max(int(itemsize), 1))


def _vmem_sizes():
    """(scoped vmem_limit_bytes, activation-tile budget), generation-aware."""
    cap = None
    try:
        cap = getattr(pltpu.get_tpu_info(), "vmem_capacity_bytes", None)
    except Exception:
        cap = None
    if not cap:
        cap = 64 * 1024 * 1024            # assume the smallest (v7x per-TC) if unknown
    limit = int(cap) * 3 // 4             # headroom for compiler scratch / semaphores
    budget = limit * 3 // 5               # x/z/out double-buffered tiles + temporaries
    return limit, budget


def _choose_tm(n_rows, lane, itemsize, vmem_budget):
    """Row-tile size: VMEM-bounded, ~4 MiB/stream, >= 4 grid steps, dtype-aligned."""
    mult = _sublane_multiple(itemsize)
    n_rows = max(int(n_rows), 1)
    row_bytes = lane * itemsize
    # VMEM per tile row: x/z/out double-buffered at the I/O dtype plus ~4 f32
    # lane-rows of in-kernel temporaries.
    vmem_per_row = 3 * 2 * row_bytes + 4 * lane * 4
    tm = max(vmem_budget // vmem_per_row, mult)
    # Bytes-based cap: ~4 MiB per stream already saturates HBM BW.
    tm = min(tm, max(_TARGET_TILE_BYTES // max(row_bytes, 1), mult))
    # Pipeline depth: keep >= 4 grid steps (>= 2 per v7x TensorCore) so the
    # BlockSpec double-buffer has a steady state.
    tm = min(tm, max(-(-n_rows // 4), mult))
    tm = max(mult, (int(tm) // mult) * mult)
    if tm >= n_rows:
        return n_rows                     # single full-extent block (no 8-row constraint)
    steps = -(-n_rows // tm)
    if steps % 2:                         # prefer even step count for v7x's 2 TCs
        alt = -(-n_rows // (steps + 1))
        alt = max(mult, (-(-alt // mult)) * mult)
        if alt < n_rows and (-(-n_rows // alt)) % 2 == 0:
            tm = alt
    return tm


def skip_connection(X, new_X, gamma, beta, *, dropout_p=0.0, tm=None):
    """Z = LayerNorm(X + dropout(new_X)) over the last axis (inference only)."""
    if dropout_p != 0.0:
        # TODO(synk): training-mode dropout (random masking) not implemented.
        raise NotImplementedError("training-mode dropout not implemented")

    orig_shape = X.shape
    D = orig_shape[-1]
    out_dtype = X.dtype
    x2 = X.reshape(-1, D)
    z2 = new_X.reshape(-1, D)
    N = x2.shape[0]

    gamma_f = gamma.reshape(1, D).astype(jnp.float32)
    beta_f = beta.reshape(1, D).astype(jnp.float32)

    vmem_limit, vmem_budget = _vmem_sizes()

    if D < 128:
        # Lane-dense packing: pad D to the next power of two (divides 128) and
        # pack `pack` consecutive rows into one 128-lane row.
        d_pad = pl.next_power_of_2(D)
        pack = 128 // d_pad
        lane = 128
        rows = -(-N // pack)
        pad_rows = rows * pack - N
        if pad_rows or d_pad != D:
            # One-time copy only for ragged N or non-power-of-2 D; the generic
            # row-tile padding of the old kernel is gone (edge blocks instead).
            x2 = jnp.pad(x2, ((0, pad_rows), (0, d_pad - D)))
            z2 = jnp.pad(z2, ((0, pad_rows), (0, d_pad - D)))
        x2 = x2.reshape(rows, lane)
        z2 = z2.reshape(rows, lane)
        gamma_k = jnp.tile(jnp.pad(gamma_f, ((0, 0), (0, d_pad - D))), (1, pack))
        beta_k = jnp.tile(jnp.pad(beta_f, ((0, 0), (0, d_pad - D))), (1, pack))
        p_pad = max(pack, 8)                          # sublane-friendly segment count
        lane_ids = jnp.arange(lane, dtype=jnp.int32)
        seg_ids = lane_ids // d_pad
        valid = (lane_ids % d_pad) < D
        col_ids = jnp.arange(p_pad, dtype=jnp.int32)
        seg_onehot = seg_ids[:, None] == col_ids[None, :]
        e_red = (seg_onehot & valid[:, None]).astype(jnp.float32)     # (128, p_pad)
        e_bc = seg_onehot.T.astype(jnp.float32)                       # (p_pad, 128)
        kernel = functools.partial(_skip_ln_packed_kernel, d=D)
        extra_inputs = (e_red, e_bc)
    else:
        d_pad, pack, lane, rows = D, 1, D, N
        gamma_k, beta_k = gamma_f, beta_f
        kernel = _skip_ln_kernel
        extra_inputs = ()

    if tm is None:
        tm = _choose_tm(rows, lane, x2.dtype.itemsize, vmem_budget)
    else:
        mult = _sublane_multiple(x2.dtype.itemsize)
        tm = max(mult, (int(tm) // mult) * mult)
        if tm >= rows:
            tm = rows

    grid = pl.cdiv(rows, tm)                    # ragged last tile handled by edge blocks
    tile_spec = pl.BlockSpec((tm, lane), lambda i: (i, 0))
    resident = pl.BlockSpec(memory_space=pltpu.MemorySpace.VMEM)

    out = pl.pallas_call(
        kernel,
        out_shape=jax.ShapeDtypeStruct((rows, lane), out_dtype),
        grid_spec=pltpu.PrefetchScalarGridSpec(
            num_scalar_prefetch=0,
            grid=(grid,),
            in_specs=[tile_spec, tile_spec, resident, resident]
                     + [resident] * len(extra_inputs),
            out_specs=tile_spec,
        ),
        compiler_params=pltpu.CompilerParams(
            # Shards the row axis across v7x's two TensorCores; no-op on 1-TC chips.
            dimension_semantics=("parallel",),
            vmem_limit_bytes=vmem_limit,
        ),
    )(x2, z2, gamma_k, beta_k, *extra_inputs)

    if pack > 1:
        out = out.reshape(rows * pack, d_pad)
        if rows * pack != N or d_pad != D:
            out = out[:N, :D]
    return out.reshape(orig_shape)


def _reference(X, new_X, gamma, beta):
    s = (X + new_X).astype(jnp.float32)
    mean = jnp.mean(s, axis=-1, keepdims=True)
    var = jnp.mean((s - mean) ** 2, axis=-1, keepdims=True)
    return ((s - mean) * jax.lax.rsqrt(var + EPS) * gamma + beta).astype(X.dtype)


def _run_case(key, shape):
    D = shape[-1]
    k1, k2, k3, k4 = jax.random.split(key, 4)
    X = jax.random.normal(k1, shape, dtype=jnp.float32)
    new_X = jax.random.normal(k2, shape, dtype=jnp.float32)
    gamma = 1.0 + 0.1 * jax.random.normal(k3, (D,), dtype=jnp.float32)
    beta = 0.1 * jax.random.normal(k4, (D,), dtype=jnp.float32)
    out = jax.block_until_ready(skip_connection(X, new_X, gamma, beta))
    ref = _reference(X, new_X, gamma, beta)
    assert out.shape == X.shape
    err = jnp.max(jnp.abs(out - ref))
    assert err < 2e-5, (shape, err)


if __name__ == "__main__":
    key = jax.random.PRNGKey(0)
    ks = jax.random.split(key, 3)

    # Primary case (module-implied small shape): packed path, D = norm_dim = 32.
    _run_case(ks[0], (2, 8, 32))
    # Generic path with a ragged row grid (N=100 not divisible by the row tile):
    # exercises Pallas edge-block reads/writes instead of wrapper-side padding.
    _run_case(ks[1], (4, 25, 256))
    # Packed path with non-power-of-2 D and N not divisible by pack
    # (lane padding + valid-lane-masked one-hot reductions).
    _run_case(ks[2], (2, 7, 24))

    print("KERNEL_OK")
</pallas_src>

<mosaic_0001>
module attributes {stable_mosaic.version = 11 : i64} {
  func.func @_skip_ln_packed_kernel(%arg0: i32, %arg1: memref<4x128xf32, #tpu.memory_space<vmem>>, %arg2: memref<4x128xf32, #tpu.memory_space<vmem>>, %arg3: memref<1x128xf32, #tpu.memory_space<vmem>>, %arg4: memref<1x128xf32, #tpu.memory_space<vmem>>, %arg5: memref<128x8xf32, #tpu.memory_space<vmem>>, %arg6: memref<8x128xf32, #tpu.memory_space<vmem>>, %arg7: memref<4x128xf32, #tpu.memory_space<vmem>>) attributes {dimension_semantics = [#tpu.dimension_semantics<parallel>], iteration_bounds = array<i64: 1>, scalar_prefetch = 0 : i64, scratch_operands = 0 : i64, tpu.core_type = #tpu.core_type<tc>, window_params = [{transform_indices = @transform_0, window_bounds = array<i64: 4, 128>}, {transform_indices = @transform_1, window_bounds = array<i64: 4, 128>}, {pipeline_mode = #tpu.pipeline_mode<synchronous>, transform_indices = @transform_2, window_bounds = array<i64: 1, 128>}, {pipeline_mode = #tpu.pipeline_mode<synchronous>, transform_indices = @transform_3, window_bounds = array<i64: 1, 128>}, {pipeline_mode = #tpu.pipeline_mode<synchronous>, transform_indices = @transform_4, window_bounds = array<i64: 128, 8>}, {pipeline_mode = #tpu.pipeline_mode<synchronous>, transform_indices = @transform_5, window_bounds = array<i64: 8, 128>}, {transform_indices = @transform_6, window_bounds = array<i64: 4, 128>}]} {
    %c0 = arith.constant 0 : index
    %c0_0 = arith.constant 0 : index
    %0 = vector.load %arg1[%c0, %c0_0] : memref<4x128xf32, #tpu.memory_space<vmem>>, vector<4x128xf32>
    %c0_1 = arith.constant 0 : index
    %c0_2 = arith.constant 0 : index
    %1 = vector.load %arg2[%c0_1, %c0_2] : memref<4x128xf32, #tpu.memory_space<vmem>>, vector<4x128xf32>
    %2 = arith.addf %0, %1 : vector<4x128xf32>
    %c0_3 = arith.constant 0 : index
    %c0_4 = arith.constant 0 : index
    %3 = vector.load %arg5[%c0_3, %c0_4] : memref<128x8xf32, #tpu.memory_space<vmem>>, vector<128x8xf32>
    %c0_5 = arith.constant 0 : index
    %c0_6 = arith.constant 0 : index
    %4 = vector.load %arg6[%c0_5, %c0_6] : memref<8x128xf32, #tpu.memory_space<vmem>>, vector<8x128xf32>
    %cst = arith.constant dense<0.000000e+00> : vector<4x8xf32>
    %5 = tpu.matmul %2, %3, %cst {dimension_numbers = #tpu.dot_dimension_numbers<[1], [0], [0], [1], [0, 0, 1, 1], [], []>, precision = #tpu.contract_precision<fp32>} : vector<4x128xf32>, vector<128x8xf32>, vector<4x8xf32> -> vector<4x8xf32>
    %cst_7 = arith.constant 3.125000e-02 : f32
    %6 = vector.broadcast %cst_7 : f32 to vector<4x8xf32>
    %7 = arith.mulf %5, %6 : vector<4x8xf32>
    %cst_8 = arith.constant dense<0.000000e+00> : vector<4x128xf32>
    %8 = tpu.matmul %7, %4, %cst_8 {dimension_numbers = #tpu.dot_dimension_numbers<[1], [0], [0], [1], [0, 0, 1, 1], [], []>, precision = #tpu.contract_precision<fp32>} : vector<4x8xf32>, vector<8x128xf32>, vector<4x128xf32> -> vector<4x128xf32>
    %9 = arith.subf %2, %8 : vector<4x128xf32>
    %10 = arith.mulf %9, %9 : vector<4x128xf32>
    %cst_9 = arith.constant dense<0.000000e+00> : vector<4x8xf32>
    %11 = tpu.matmul %10, %3, %cst_9 {dimension_numbers = #tpu.dot_dimension_numbers<[1], [0], [0], [1], [0, 0, 1, 1], [], []>, precision = #tpu.contract_precision<fp32>} : vector<4x128xf32>, vector<128x8xf32>, vector<4x8xf32> -> vector<4x8xf32>
    %cst_10 = arith.constant 3.125000e-02 : f32
    %12 = vector.broadcast %cst_10 : f32 to vector<4x8xf32>
    %13 = arith.mulf %11, %12 : vector<4x8xf32>
    %cst_11 = arith.constant 9.99999974E-6 : f32
    %14 = vector.broadcast %cst_11 : f32 to vector<4x8xf32>
    %15 = arith.addf %13, %14 : vector<4x8xf32>
    %16 = math.rsqrt %15 : vector<4x8xf32>
    %cst_12 = arith.constant dense<0.000000e+00> : vector<4x128xf32>
    %17 = tpu.matmul %16, %4, %cst_12 {dimension_numbers = #tpu.dot_dimension_numbers<[1], [0], [0], [1], [0, 0, 1, 1], [], []>, precision = #tpu.contract_precision<fp32>} : vector<4x8xf32>, vector<8x128xf32>, vector<4x128xf32> -> vector<4x128xf32>
    %18 = arith.mulf %9, %17 : vector<4x128xf32>
    %c0_13 = arith.constant 0 : index
    %c0_14 = arith.constant 0 : index
    %19 = vector.load %arg3[%c0_13, %c0_14] : memref<1x128xf32, #tpu.memory_space<vmem>>, vector<1x128xf32>
    %20 = vector.broadcast %19 : vector<1x128xf32> to vector<4x128xf32>
    %21 = arith.mulf %18, %20 : vector<4x128xf32>
    %c0_15 = arith.constant 0 : index
    %c0_16 = arith.constant 0 : index
    %22 = vector.load %arg4[%c0_15, %c0_16] : memref<1x128xf32, #tpu.memory_space<vmem>>, vector<1x128xf32>
    %23 = vector.broadcast %22 : vector<1x128xf32> to vector<4x128xf32>
    %24 = arith.addf %21, %23 : vector<4x128xf32>
    %c0_17 = arith.constant 0 : index
    %c0_18 = arith.constant 0 : index
    %25 = vector.load %arg7[%c0_17, %c0_18] : memref<4x128xf32, #tpu.memory_space<vmem>>, vector<4x128xf32>
    tpu.vector_store %arg7[%c0_17, %c0_18], %24 {strides = array<i32>} : memref<4x128xf32, #tpu.memory_space<vmem>>, vector<4x128xf32>,
    return
  }
  func.func @transform_0(%arg0: i32) -> (i32, i32) {
    %c0_i32 = arith.constant 0 : i32
    %c0_i32_0 = arith.constant 0 : i32
    return %arg0, %c0_i32 : i32, i32
  }
  func.func @transform_1(%arg0: i32) -> (i32, i32) {
    %c0_i32 = arith.constant 0 : i32
    %c0_i32_0 = arith.constant 0 : i32
    return %arg0, %c0_i32 : i32, i32
  }
  func.func @transform_2(%arg0: i32) -> (i32, i32) {
    %c0_i32 = arith.constant 0 : i32
    %c0_i32_0 = arith.constant 0 : i32
    %c0_i32_1 = arith.constant 0 : i32
    return %c0_i32, %c0_i32_0 : i32, i32
  }
  func.func @transform_3(%arg0: i32) -> (i32, i32) {
    %c0_i32 = arith.constant 0 : i32
    %c0_i32_0 = arith.constant 0 : i32
    %c0_i32_1 = arith.constant 0 : i32
    return %c0_i32, %c0_i32_0 : i32, i32
  }
  func.func @transform_4(%arg0: i32) -> (i32, i32) {
    %c0_i32 = arith.constant 0 : i32
    %c0_i32_0 = arith.constant 0 : i32
    %c0_i32_1 = arith.constant 0 : i32
    return %c0_i32, %c0_i32_0 : i32, i32
  }
  func.func @transform_5(%arg0: i32) -> (i32, i32) {
    %c0_i32 = arith.constant 0 : i32
    %c0_i32_0 = arith.constant 0 : i32
    %c0_i32_1 = arith.constant 0 : i32
    return %c0_i32, %c0_i32_0 : i32, i32
  }
  func.func @transform_6(%arg0: i32) -> (i32, i32) {
    %c0_i32 = arith.constant 0 : i32
    %c0_i32_0 = arith.constant 0 : i32
    return %arg0, %c0_i32 : i32, i32
  }
}

</mosaic_0001>

<bundles_post_ra>
// kernel: tpu_custom_call.1
= control target key start
LH: loop header
LB: loop body
LE: loop exit
PB: predicated region body
PF: predicated region fallthrough
CT: control target
= control target key end

     0   :  { %v3331_v3 = vmov 0.0|0.0   ;;  %vm3332_vm0 = vmmov 0   ;;  %v3333_v8 = vmov 0.0   ;;  %s3898_s0 = inlined_call_operand.vmem [shape: f32[4,128], index: 0, kind: input, shape index: {}]   ;;  %s3899_s1 = inlined_call_operand.vmem [shape: f32[4,128], index: 1, kind: input, shape index: {}]   ;;  %s3900_s2 = inlined_call_operand.vmem [shape: f32[1,128], index: 2, kind: input, shape index: {}]   ;;  %s3901_s3 = inlined_call_operand.vmem [shape: f32[1,128], index: 3, kind: input, shape index: {}]   ;;  %s3902_s4 = inlined_call_operand.vmem [shape: f32[128,8], index: 4, kind: input, shape index: {}]   ;;  %s3903_s5 = inlined_call_operand.vmem [shape: f32[8,128], index: 5, kind: input, shape index: {}]   ;;  %s3904_s6 = inlined_call_operand.hbm [shape: f32[4,128], index: 6, kind: output, shape index: {}]  }
   0x1   :  { %v27_v0 = vld [vmem:[%s3902_s4] sm:$0xff]  ;;  %v28_v1 = vld [vmem:[%s3902_s4 + $0x8] sm:$0xff]  ;;  %v29_v2 = vld [vmem:[%s3902_s4 + $0x10] sm:$0xff]  ;;  %2973 = vmatprep.subr.bf16.mxu0 %v3331_v3  ;;  %2525 = vmatprep.mubr.msk.f32.mxu0 %vm3332_vm0, %v3333_v8 }
   0x2   :  { %v45_v4 = vand.u32 4294901760, %v27_v0  ;;  %v48_v5 = vand.u32 4294901760, %v28_v1  ;;  %v30_v6 = vld [vmem:[%s3902_s4 + $0x18] sm:$0xff]  ;;  %v51_v7 = vand.u32 4294901760, %v29_v2  ;;  %v31_v10 = vld [vmem:[%s3902_s4 + $0x20] sm:$0xff]  ;;  %v32_v11 = vld [vmem:[%s3902_s4 + $0x28] sm:$0xff]  ;;  %2703 = vmatprep.subr.mxu1 %v3333_v8  ;;  %2705 = vmatprep.mubr.msk.f32.mxu1 %vm3332_vm0, %v3333_v8 }
   0x3   :  { %v54_v9 = vand.u32 4294901760, %v30_v6  ;;  %v57_v14 = vand.u32 4294901760, %v31_v10  ;;  %v60_v15 = vand.u32 4294901760, %v32_v11  ;;  %v33_v16 = vld [vmem:[%s3902_s4 + $0x30] sm:$0xff]  ;;  %v34_v17 = vld [vmem:[%s3902_s4 + $0x38] sm:$0xff] }
   0x4   :  { %v3394_v12 = vpack.c.bf16 %v48_v5, %v45_v4 }
   0x5   :  { %v3397_v13 = vpack.c.bf16 %v54_v9, %v51_v7 }
   0x6   :  { %2975 = vmatpush3.bf16.msra.mxu0 %v3394_v12 }
   0x7   :  { %2976 = vmatprep.subr.bf16.mxu0 %v3331_v3 }
   0x8   :  { %11 = vsyncpa [#allocation3], 0  ;;  %v24_v18 = vld [vmem:[%s3898_s0] sm:$0xf]  ;;  %v3413_v20 = vpack.c.bf16 %v60_v15, %v57_v14  ;;  %v63_v21 = vand.u32 4294901760, %v33_v16  ;;  %v66_v22 = vand.u32 4294901760, %v34_v17  ;;  %v3436_v30 = vsub.f32 %v27_v0, %v45_v4 }
   0x9   :  { %v25_v19 = vld [vmem:[%s3899_s1] sm:$0xf]  ;;  %v36_v24 = vld [vmem:[%s3902_s4 + $0x48] sm:$0xff]  ;;  %v37_v26 = vld [vmem:[%s3902_s4 + $0x50] sm:$0xff]  ;;  %v3447_v36 = vsub.f32 %v28_v1, %v48_v5  ;;  %v3454_v45 = vsub.f32 %v29_v2, %v51_v7  ;;  %v3460_v48 = vsub.f32 %v30_v6, %v54_v9  ;;  %v3462_v49 = vsub.f32 %v31_v10, %v57_v14  ;;  %s3334_s11 = smov [#allocation2]  }
   0xa   :  { %2978 = vmatpush3.bf16.msra.mxu0 %v3397_v13  ;;  %v35_v23 = vld [vmem:[%s3902_s4 + $0x40] sm:$0xff]  ;;  %v3422_v25 = vadd.f32 %v25_v19, %v24_v18  ;;  %v38_v27 = vld [vmem:[%s3902_s4 + $0x58] sm:$0xff]  ;;  %v40_v29 = vld [vmem:[%s3902_s4 + $0x68] sm:$0xff]  ;;  %v3439_v31 = vpack.c.bf16 %v66_v22, %v63_v21  ;;  %v72_v33 = vand.u32 4294901760, %v36_v24  ;;  %v75_v38 = vand.u32 4294901760, %v37_v26  ;;  %s2255_s12 = sshll.u32 %s3334_s11, 4  ;;  %s2256_s12 = int_to_ptr.vmem [resolvable:$true] %s2255_s12 }
   0xb   :  { %2979 = vmatprep.subr.bf16.mxu0 %v3331_v3  ;;  %v39_v28 = vld [vmem:[%s3902_s4 + $0x60] sm:$0xff]  ;;  %v69_v32 = vand.u32 4294901760, %v35_v23  ;;  %v41_v34 = vld [vmem:[%s3902_s4 + $0x70] sm:$0xff]  ;;  %v42_v35 = vld [vmem:[%s3902_s4 + $0x78] sm:$0xff]  ;;  %v78_v39 = vand.u32 4294901760, %v38_v27  ;;  %v84_v41 = vand.u32 4294901760, %v40_v29  ;;  %v3477_v56 = vsub.f32 %v32_v11, %v60_v15  ;;  %p3312_p1 = scmp.lt.s32.totalorder %s2256_s12, %s2256_s12 }
   0xc   :  { %v3451_v37 = vand.u32 4294901760, %v3422_v25  ;;  %v81_v40 = vand.u32 4294901760, %v39_v28  ;;  %v87_v42 = vand.u32 4294901760, %v41_v34  ;;  %v90_v43 = vand.u32 4294901760, %v42_v35  ;;  %s3307_s13 = scalar_lea.vmem %s2256_s12, 64 }
   0xd   :  { %v138_v44 = vand.u32 4294901760, %v3436_v30  ;;  %v3457_v46 = vpack.c.bf16 %v72_v33, %v69_v32  ;;  %v145_v47 = vand.u32 4294901760, %v3447_v36  ;;  %v3469_v51 = vpack.c.bf16 %v78_v39, %v75_v38  ;;  %p3308_p0 = scmp.ne.s32.totalorder %s2256_s12, %s3307_s13  ;;  %p3313_p2 = scmp.lt.s32.totalorder %s3307_s13, %s3307_s13 }
   0xe   :  { %2981 = vmatpush3.bf16.msra.mxu0 %v3413_v20  ;;  %v3467_v50 = vsub.f32 %v3422_v25, %v3451_v37  ;;  %v3471_v52 = vpack.c.bf16 %v84_v41, %v81_v40  ;;  %v3473_v53 = vpack.c.bf16 %v90_v43, %v87_v42  ;;  %v152_v55 = vand.u32 4294901760, %v3454_v45 }
   0xf   :  { %2982 = vmatprep.subr.bf16.mxu0 %v3331_v3  ;;  %v139_v54 = vsub.f32 %v3436_v30, %v138_v44  ;;  %v146_v57 = vsub.f32 %v3447_v36, %v145_v47  ;;  %v159_v58 = vand.u32 4294901760, %v3460_v48  ;;  %v166_v59 = vand.u32 4294901760, %v3462_v49  ;;  %p3314_p3 = por %p3313_p2, %p3312_p1 }
  0x10   :  { %v3483_v60 = vsub.f32 %v33_v16, %v63_v21  ;;  %v127_v61 = vand.u32 4294901760, %v3467_v50  ;;  %v3487_v62 = vsub.f32 %v34_v17, %v66_v22  ;;  %v3489_v63 = vsub.f32 %v35_v23, %v69_v32 }
  0x11   :  { %v3491_v0 = vsub.f32 %v36_v24, %v72_v33  ;;  %v3493_v1 = vsub.f32 %v37_v26, %v75_v38  ;;  %v3495_v2 = vsub.f32 %v38_v27, %v78_v39  ;;  %v3497_v4 = vsub.f32 %v39_v28, %v81_v40  ;;  %p3315_p4 = pnand %p3314_p3, %p3308_p0 }
  0x12   :  { %2984 = vmatpush3.bf16.msra.mxu0 %v3439_v31  ;;  %v3499_v5 = vsub.f32 %v40_v29, %v84_v41  ;;  %v140_v6 = vand.u32 4294901760, %v139_v54  ;;  %v173_v7 = vand.u32 4294901760, %v3477_v56  ;;  %v3502_v9 = vsub.f32 %v41_v34, %v87_v42 }
  0x13   :  { %2985 = vmatprep.subr.bf16.mxu0 %v3331_v3  ;;  %v3504_v10 = vsub.f32 %v42_v35, %v90_v43  ;;  %v147_v11 = vand.u32 4294901760, %v146_v57  ;;  %v153_v14 = vsub.f32 %v3454_v45, %v152_v55  ;;  %v160_v15 = vsub.f32 %v3460_v48, %v159_v58 }
  0x14   :  { %v180_v16 = vand.u32 4294901760, %v3483_v60  ;;  %v128_v17 = vsub.f32 %v3467_v50, %v127_v61  ;;  %v187_v18 = vand.u32 4294901760, %v3487_v62  ;;  %v194_v19 = vand.u32 4294901760, %v3489_v63 }
  0x15   :  { %v201_v21 = vand.u32 4294901760, %v3491_v0  ;;  %v208_v22 = vand.u32 4294901760, %v3493_v1  ;;  %v215_v23 = vand.u32 4294901760, %v3495_v2  ;;  %v222_v24 = vand.u32 4294901760, %v3497_v4 }
  0x16   :  { %2987 = vmatpush3.bf16.msra.mxu0 %v3457_v46  ;;  %v229_v26 = vand.u32 4294901760, %v3499_v5  ;;  %v236_v27 = vand.u32 4294901760, %v3502_v9  ;;  %v243_v28 = vand.u32 4294901760, %v3504_v10  ;;  %v3523_v29 = vpack.c.bf16 %v145_v47, %v138_v44 }
  0x17   :  { %2988 = vmatprep.subr.bf16.mxu0 %v3331_v3  ;;  %v3525_v32 = vpack.c.bf16 %v159_v58, %v152_v55  ;;  %v3528_v33 = vpack.c.bf16 %v173_v7, %v166_v59  ;;  %v3530_v34 = vpack.c.bf16 %v187_v18, %v180_v16  ;;  %v3532_v35 = vpack.c.bf16 %v201_v21, %v194_v19 }
  0x18   :  { %v3534_v38 = vpack.c.bf16 %v215_v23, %v208_v22  ;;  %v3537_v39 = vpack.c.bf16 %v229_v26, %v222_v24  ;;  %v3539_v40 = vpack.c.bf16 %v243_v28, %v236_v27  ;;  %v129_v41 = vand.u32 4294901760, %v128_v17 }
  0x19   :  { %v167_v42 = vsub.f32 %v3462_v49, %v166_v59  ;;  %v3543_v43 = vpack.c.bf16 %v147_v11, %v140_v6  ;;  %v154_v44 = vand.u32 4294901760, %v153_v14  ;;  %v161_v47 = vand.u32 4294901760, %v160_v15 }
  0x1a   :  { %2990 = vmatpush3.bf16.msra.mxu0 %v3469_v51  ;;  %v174_v54 = vsub.f32 %v3477_v56, %v173_v7  ;;  %v181_v55 = vsub.f32 %v3483_v60, %v180_v16  ;;  %v188_v59 = vsub.f32 %v3487_v62, %v187_v18  ;;  %v195_v14 = vsub.f32 %v3489_v63, %v194_v19 }
  0x1b   :  { %2991 = vmatprep.subr.bf16.mxu0 %v3331_v3  ;;  %v3549_v57 = vpack.c.bf16 %v161_v47, %v154_v44  ;;  %v168_v58 = vand.u32 4294901760, %v167_v42  ;;  %v202_v15 = vsub.f32 %v3491_v0, %v201_v21  ;;  %v209_v16 = vsub.f32 %v3493_v1, %v208_v22 }
  0x1c   :  { %v175_v17 = vand.u32 4294901760, %v174_v54  ;;  %v182_v6 = vand.u32 4294901760, %v181_v55  ;;  %v189_v11 = vand.u32 4294901760, %v188_v59  ;;  %v216_v44 = vsub.f32 %v3495_v2, %v215_v23 }
  0x1d   :  { %v203_v42 = vand.u32 4294901760, %v202_v15  ;;  %v223_v47 = vsub.f32 %v3497_v4, %v222_v24  ;;  %v210_v21 = vand.u32 4294901760, %v209_v16  ;;  %v230_v22 = vsub.f32 %v3499_v5, %v229_v26 }
  0x1e   :  { %2993 = vmatpush3.bf16.msra.mxu0 %v3471_v52  ;;  %v3556_v7 = vpack.c.bf16 %v175_v17, %v168_v58  ;;  %v3563_v18 = vpack.c.bf16 %v189_v11, %v182_v6  ;;  %v217_v54 = vand.u32 4294901760, %v216_v44  ;;  %v237_v55 = vsub.f32 %v3502_v9, %v236_v27 }
  0x1f   :  { %2994 = vmatprep.subr.bf16.mxu0 %v3331_v3  ;;  %v224_v23 = vand.u32 4294901760, %v223_v47  ;;  %v231_v17 = vand.u32 4294901760, %v230_v22  ;;  %v244_v24 = vsub.f32 %v3504_v10, %v243_v28  ;;  %v3590_v28 = vpack.c.bf16 %v3447_v36, %v3436_v30 }
  0x20   :  { %v3575_v58 = vpack.c.bf16 %v217_v54, %v210_v21  ;;  %v238_v6 = vand.u32 4294901760, %v237_v55  ;;  %v3597_v11 = vpack.c.bf16 %v3460_v48, %v3454_v45  ;;  %v3605_v30 = vpack.c.bf16 %v3477_v56, %v3462_v49 }
  0x21   :  { %v3580_v59 = vpack.c.bf16 %v231_v17, %v224_v23  ;;  %v245_v26 = vand.u32 4294901760, %v244_v24  ;;  %v3611_v36 = vpack.c.bf16 %v3487_v62, %v3483_v60  ;;  %v3617_v45 = vpack.c.bf16 %v3491_v0, %v3489_v63 }
  0x22   :  { %2996 = vmatpush3.bf16.msra.mxu0 %v3473_v53  ;;  %v3623_v48 = vpack.c.bf16 %v3495_v2, %v3493_v1  ;;  %v3629_v49 = vpack.c.bf16 %v3499_v5, %v3497_v4  ;;  %v3635_v56 = vpack.c.bf16 %v3504_v10, %v3502_v9  ;;  %vm686_vm1 = vcmask 64512  }
  0x23   :  { %2997 = vmatprep.subr.bf16.mxu0 %v3331_v3  ;;  %v3584_v27 = vpack.c.bf16 %v245_v26, %v238_v6 }
  0x25   :  { %2526 = vmatmul.mubr.f32.vlgmr.msra.gmra.mrb[0].mxu0 %v129_v41  ;;  %v196_v41 = vand.u32 4294901760, %v195_v14 }
  0x26   :  { %2999 = vmatpush3.bf16.msra.mxu0 %v3543_v43  ;;  %2560 = vmatprep.mubr.msk.f32.mxu0 %vm3332_vm0, %v3333_v8 }
  0x27   :  { %3000 = vmatprep.subr.bf16.mxu0 %v3331_v3  ;;  %v3569_v19 = vpack.c.bf16 %v203_v42, %v196_v41 }
  0x2a   :  { %3002 = vmatpush3.bf16.msra.mxu0 %v3549_v57 }
  0x2b   :  { %3003 = vmatprep.subr.bf16.mxu0 %v3331_v3 }
  0x2e   :  { %3005 = vmatpush3.bf16.msra.mxu0 %v3556_v7 }
  0x2f   :  { %3006 = vmatprep.subr.bf16.mxu0 %v3331_v3 }
  0x32   :  { %3008 = vmatpush3.bf16.msra.mxu0 %v3563_v18 }
  0x33   :  { %3009 = vmatprep.subr.bf16.mxu0 %v3331_v3 }
  0x36   :  { %3011 = vmatpush3.bf16.msra.mxu0 %v3569_v19 }
  0x37   :  { %3012 = vmatprep.subr.bf16.mxu0 %v3331_v3 }
  0x3a   :  { %3014 = vmatpush3.bf16.msra.mxu0 %v3575_v58 }
  0x3b   :  { %3015 = vmatprep.subr.bf16.mxu0 %v3331_v3 }
  0x3e   :  { %3017 = vmatpush3.bf16.msra.mxu0 %v3580_v59 }
  0x3f   :  { %3018 = vmatprep.subr.bf16.mxu0 %v3331_v3 }
  0x42   :  { %3020 = vmatpush3.bf16.msra.mxu0 %v3584_v27 }
  0x43   :  { %3021 = vmatprep.subr.bf16.mxu0 %v3331_v3 }
  0x45   :  { %2561 = vmatmul.mubr.f32.vlgmr.msra.gmra.mrb[0].mxu0 %v3451_v37 }
  0x46   :  { %3023 = vmatpush3.bf16.msra.mxu0 %v3590_v28  ;;  %2595 = vmatprep.mubr.msk.f32.mxu0 %vm3332_vm0, %v3333_v8 }
  0x47   :  { %3024 = vmatprep.subr.bf16.mxu0 %v3331_v3 }
  0x4a   :  { %3026 = vmatpush3.bf16.msra.mxu0 %v3597_v11 }
  0x4b   :  { %3027 = vmatprep.subr.bf16.mxu0 %v3331_v3 }
  0x4e   :  { %3029 = vmatpush3.bf16.msra.mxu0 %v3605_v30 }
  0x4f   :  { %3030 = vmatprep.subr.bf16.mxu0 %v3331_v3 }
  0x52   :  { %3032 = vmatpush3.bf16.msra.mxu0 %v3611_v36 }
  0x53   :  { %3033 = vmatprep.subr.bf16.mxu0 %v3331_v3 }
  0x56   :  { %3035 = vmatpush3.bf16.msra.mxu0 %v3617_v45 }
  0x57   :  { %3036 = vmatprep.subr.bf16.mxu0 %v3331_v3 }
  0x5a   :  { %3038 = vmatpush3.bf16.msra.mxu0 %v3623_v48 }
  0x5b   :  { %3039 = vmatprep.subr.bf16.mxu0 %v3331_v3 }
  0x5e   :  { %3041 = vmatpush3.bf16.msra.mxu0 %v3629_v49 }
  0x5f   :  { %3042 = vmatprep.subr.bf16.mxu0 %v3331_v3 }
  0x62   :  { %3044 = vmatpush3.bf16.msra.mxu0 %v3635_v56 }
  0x63   :  { %3045 = vmatprep.subr.bf16.mxu0 %v3331_v3 }
  0x65   :  { %2596 = vmatmul.mubr.f32.vlgmr.msra.gmra.mrb[0].mxu0 %v3467_v50  ;;  %v43_v50 = vld [vmem:[%s3903_s5] sm:$0xff] }
  0x66   :  { %3047 = vmatpush3.bf16.msra.mxu0 %v3394_v12  ;;  %2630 = vmatprep.mubr.msk.f32.mxu0 %vm3332_vm0, %v3333_v8  ;;  %v3704_v60 = vand.u32 4294901760, %v43_v50 }
  0x67   :  { %3048 = vmatprep.subr.bf16.mxu0 %v3331_v3 }
  0x68   :  { %2704 = vmatpush3.msra.mxu1 %v3704_v60 }
  0x69   :  { %2708 = vmatprep.subr.mxu1 %v3333_v8 }
  0x6a   :  { %3050 = vmatpush3.bf16.msra.mxu0 %v3397_v13 }
  0x6b   :  { %3051 = vmatprep.subr.bf16.mxu0 %v3331_v3 }
  0x6e   :  { %3053 = vmatpush3.bf16.msra.mxu0 %v3413_v20 }
  0x6f   :  { %3054 = vmatprep.subr.bf16.mxu0 %v3331_v3 }
  0x72   :  { %3056 = vmatpush3.bf16.msra.mxu0 %v3439_v31 }
  0x73   :  { %3057 = vmatprep.subr.bf16.mxu0 %v3331_v3 }
  0x76   :  { %3059 = vmatpush3.bf16.msra.mxu0 %v3457_v46 }
  0x77   :  { %3060 = vmatprep.subr.bf16.mxu0 %v3331_v3 }
  0x7a   :  { %3062 = vmatpush3.bf16.msra.mxu0 %v3469_v51 }
  0x7b   :  { %3063 = vmatprep.subr.bf16.mxu0 %v3331_v3 }
  0x7e   :  { %3065 = vmatpush3.bf16.msra.mxu0 %v3471_v52 }
  0x7f   :  { %3066 = vmatprep.subr.bf16.mxu0 %v3331_v3 }
  0x82   :  { %3068 = vmatpush3.bf16.msra.mxu0 %v3473_v53 }
  0x83   :  { %3069 = vmatprep.subr.bf16.mxu0 %v3331_v3 }
  0x85   :  { %2631 = vmatmul.mubr.f32.vlgmr.msra.gmra.mrb[0].mxu0 %v127_v61  ;;  %v3711_v61 = vsub.f32 %v43_v50, %v3704_v60 }
  0x86   :  { %3071 = vmatpush3.bf16.msra.mxu0 %v3523_v29  ;;  %2665 = vmatprep.mubr.msk.f32.mxu0 %vm3332_vm0, %v3333_v8 }
  0x87   :  { %3072 = vmatprep.subr.bf16.mxu0 %v3331_v3  ;;  %v3715_v1 = vand.u32 4294901760, %v3711_v61 }
  0x89   :  { %v770_v5 = vsub.f32 %v3711_v61, %v3715_v1 }
  0x8a   :  { %3074 = vmatpush3.bf16.msra.mxu0 %v3525_v32 }
  0x8b   :  { %3075 = vmatprep.subr.bf16.mxu0 %v3331_v3  ;;  %v3719_v14 = vand.u32 4294901760, %v770_v5 }
  0x8e   :  { %3077 = vmatpush3.bf16.msra.mxu0 %v3528_v33 }
  0x8f   :  { %3078 = vmatprep.subr.bf16.mxu0 %v3331_v3 }
  0x92   :  { %3080 = vmatpush3.bf16.msra.mxu0 %v3530_v34 }
  0x93   :  { %3081 = vmatprep.subr.bf16.mxu0 %v3331_v3 }
  0x96   :  { %3083 = vmatpush3.bf16.msra.mxu0 %v3532_v35 }
  0x97   :  { %3084 = vmatprep.subr.bf16.mxu0 %v3331_v3 }
  0x9a   :  { %3086 = vmatpush3.bf16.msra.mxu0 %v3534_v38 }
  0x9b   :  { %3087 = vmatprep.subr.bf16.mxu0 %v3331_v3 }
  0x9e   :  { %3089 = vmatpush3.bf16.msra.mxu0 %v3537_v39 }
  0x9f   :  { %3090 = vmatprep.subr.bf16.mxu0 %v3331_v3 }
  0xa2   :  { %3092 = vmatpush3.bf16.msra.mxu0 %v3539_v40 }
  0xa3   :  { %3093 = vmatprep.subr.bf16.mxu0 %v3331_v3 }
  0xa5   :  { %2666 = vmatmul.mubr.f32.vlgmr.msra.gmra.mrb[0].mxu0 %v3451_v37 }
  0xa6   :  { %3095 = vmatpush3.bf16.msra.mxu0 %v3394_v12  ;;  %2700 = vmatprep.mubr.msk.f32.mxu0 %vm3332_vm0, %v3333_v8 }
  0xa7   :  { %3096 = vmatprep.subr.bf16.mxu0 %v3331_v3 }
  0xaa   :  { %3098 = vmatpush3.bf16.msra.mxu0 %v3397_v13 }
  0xab   :  { %3099 = vmatprep.subr.bf16.mxu0 %v3331_v3 }
  0xae   :  { %3101 = vmatpush3.bf16.msra.mxu0 %v3413_v20 }
  0xaf   :  { %3102 = vmatprep.subr.bf16.mxu0 %v3331_v3 }
  0xb2   :  { %3104 = vmatpush3.bf16.msra.mxu0 %v3439_v31 }
  0xb3   :  { %3105 = vmatprep.subr.bf16.mxu0 %v3331_v3 }
  0xb6   :  { %3107 = vmatpush3.bf16.msra.mxu0 %v3457_v46 }
  0xb7   :  { %3108 = vmatprep.subr.bf16.mxu0 %v3331_v3 }
  0xba   :  { %3110 = vmatpush3.bf16.msra.mxu0 %v3469_v51 }
  0xbb   :  { %3111 = vmatprep.subr.bf16.mxu0 %v3331_v3 }
  0xbe   :  { %3113 = vmatpush3.bf16.msra.mxu0 %v3471_v52 }
  0xbf   :  { %3114 = vmatprep.subr.bf16.mxu0 %v3331_v3 }
  0xc2   :  { %3116 = vmatpush3.bf16.msra.mxu0 %v3473_v53 }
  0xc3   :  { %2943 = vmatprep.subr.mxu0 %v3333_v8 }
  0xc5   :  { %2701 = vmatmul.mubr.f32.vlgmr.msra.gmra.mrb[0].mxu0 %v3451_v37 }
  0xc6   :  { %2945 = vmatprep.mubr.msk.f32.mxu0 %vm3332_vm0, %v3333_v8  ;;  %2944 = vmatpush3.msra.mxu0 %v3704_v60 }
  0xc7   :  { %2948 = vmatprep.subr.mxu0 %v3333_v8 }
 0x198   :  { %v681_v37 = vpop.f32.mrb[0].mxu0 }
 0x199   :  { %v685_v62 = vmul.f32 0.03125, %v681_v37  ;;  %v2702_v63 = vpop.f32.mrb[1].mxu0 }
 0x19b   :  { %v688_v0 = vsel %vm686_vm1, %v685_v62, 0 }
 0x19c   :  { %v756_v2 = vand.u32 4294901760, %v688_v0 }
 0x19e   :  { %v757_v4 = vsub.f32 %v688_v0, %v756_v2 }
 0x1a0   :  { %v758_v9 = vand.u32 4294901760, %v757_v4 }
 0x1a2   :  { %v759_v10 = vsub.f32 %v757_v4, %v758_v9 }
 0x1a4   :  { %v760_v15 = vand.u32 4294901760, %v759_v10 }
 0x1a6   :  { %2706 = vmatmul.mubr.f32.vlgmr.msra.gmra.mrb[0].mxu1 %v760_v15 }
 0x1a7   :  { %2709 = vmatpush3.msra.mxu1 %v3719_v14  ;;  %2710 = vmatprep.mubr.msk.f32.mxu1 %vm3332_vm0, %v3333_v8 }
 0x1a8   :  { %2713 = vmatprep.subr.mxu1 %v3333_v8 }
 0x1ae   :  { %2711 = vmatmul.mubr.f32.vlgmr.msra.gmra.mrb[0].mxu1 %v756_v2 }
 0x1af   :  { %2714 = vmatpush3.msra.mxu1 %v3711_v61  ;;  %2715 = vmatprep.mubr.msk.f32.mxu1 %vm3332_vm0, %v3333_v8 }
 0x1b0   :  { %2718 = vmatprep.subr.mxu1 %v3333_v8 }
 0x1b6   :  { %2716 = vmatmul.mubr.f32.vlgmr.msra.gmra.mrb[0].mxu1 %v757_v4 }
 0x1b7   :  { %2719 = vmatpush3.msra.mxu1 %v3704_v60  ;;  %2720 = vmatprep.mubr.msk.f32.mxu1 %vm3332_vm0, %v3333_v8 }
 0x1b8   :  { %2723 = vmatprep.subr.mxu1 %v3333_v8 }
 0x1be   :  { %2721 = vmatmul.mubr.f32.vlgmr.msra.gmra.mrb[0].mxu1 %v758_v9 }
 0x1bf   :  { %2724 = vmatpush3.msra.mxu1 %v3715_v1  ;;  %2725 = vmatprep.mubr.msk.f32.mxu1 %vm3332_vm0, %v3333_v8 }
 0x1c0   :  { %2728 = vmatprep.subr.mxu1 %v3333_v8 }
 0x1c6   :  { %2726 = vmatmul.mubr.f32.vlgmr.msra.gmra.mrb[0].mxu1 %v756_v2 }
 0x1c7   :  { %2729 = vmatpush3.msra.mxu1 %v3704_v60  ;;  %2730 = vmatprep.mubr.msk.f32.mxu1 %vm3332_vm0, %v3333_v8 }
 0x1c8   :  { %3117 = vmatprep.subr.bf16.mxu1 %v3331_v3 }
 0x1ce   :  { %2731 = vmatmul.mubr.f32.vlgmr.msra.gmra.mrb[0].mxu1 %v756_v2 }
 0x1cf   :  { %3119 = vmatpush3.bf16.msra.mxu1 %v3394_v12  ;;  %2765 = vmatprep.mubr.msk.f32.mxu1 %vm3332_vm0, %v3333_v8 }
 0x1d0   :  { %3120 = vmatprep.subr.bf16.mxu1 %v3331_v3 }
 0x1d3   :  { %3122 = vmatpush3.bf16.msra.mxu1 %v3397_v13 }
 0x1d4   :  { %3123 = vmatprep.subr.bf16.mxu1 %v3331_v3 }
 0x1d7   :  { %3125 = vmatpush3.bf16.msra.mxu1 %v3413_v20 }
 0x1d8   :  { %3126 = vmatprep.subr.bf16.mxu1 %v3331_v3 }
 0x1db   :  { %3128 = vmatpush3.bf16.msra.mxu1 %v3439_v31 }
 0x1dc   :  { %3129 = vmatprep.subr.bf16.mxu1 %v3331_v3 }
 0x1df   :  { %3131 = vmatpush3.bf16.msra.mxu1 %v3457_v46 }
 0x1e0   :  { %3132 = vmatprep.subr.bf16.mxu1 %v3331_v3 }
 0x1e3   :  { %3134 = vmatpush3.bf16.msra.mxu1 %v3469_v51 }
 0x1e4   :  { %3135 = vmatprep.subr.bf16.mxu1 %v3331_v3 }
 0x1e7   :  { %3137 = vmatpush3.bf16.msra.mxu1 %v3471_v52 }
 0x1e8   :  { %3138 = vmatprep.subr.bf16.mxu1 %v3331_v3 }
 0x1eb   :  { %3140 = vmatpush3.bf16.msra.mxu1 %v3473_v53 }
 0x1ec   :  { %3141 = vmatprep.subr.bf16.mxu1 %v3331_v3 }
 0x2a1   :  { %v1132_v16 = vpop.f32.mrb[0].mxu1 }
 0x2a2   :  { %v3760_v41 = vsub.f32 %v3422_v25, %v1132_v16  ;;  %v2732_v42 = vpop.f32.mrb[1].mxu1 }
 0x2a4   :  { %v1137_v44 = vmul.f32 %v3760_v41, %v3760_v41 }
 0x2a6   :  { %v3764_v47 = vand.u32 4294901760, %v1137_v44 }
 0x2a8   :  { %v1220_v21 = vsub.f32 %v1137_v44, %v3764_v47 }
 0x2aa   :  { %v1221_v54 = vand.u32 4294901760, %v1220_v21 }
 0x2ac   :  { %v1222_v22 = vsub.f32 %v1220_v21, %v1221_v54 }
 0x2ae   :  { %v1223_v55 = vand.u32 4294901760, %v1222_v22 }
 0x2b0   :  { %2766 = vmatmul.mubr.f32.vlgmr.msra.gmra.mrb[2].mxu1 %v1223_v55 }
 0x2b1   :  { %3143 = vmatpush3.bf16.msra.mxu1 %v3543_v43  ;;  %2800 = vmatprep.mubr.msk.f32.mxu1 %vm3332_vm0, %v3333_v8 }
 0x2b2   :  { %3144 = vmatprep.subr.bf16.mxu1 %v3331_v3 }
 0x2b5   :  { %3146 = vmatpush3.bf16.msra.mxu1 %v3549_v57 }
 0x2b6   :  { %3147 = vmatprep.subr.bf16.mxu1 %v3331_v3 }
 0x2b9   :  { %3149 = vmatpush3.bf16.msra.mxu1 %v3556_v7 }
 0x2ba   :  { %3150 = vmatprep.subr.bf16.mxu1 %v3331_v3 }
 0x2bd   :  { %3152 = vmatpush3.bf16.msra.mxu1 %v3563_v18 }
 0x2be   :  { %3153 = vmatprep.subr.bf16.mxu1 %v3331_v3 }
 0x2c1   :  { %3155 = vmatpush3.bf16.msra.mxu1 %v3569_v19 }
 0x2c2   :  { %3156 = vmatprep.subr.bf16.mxu1 %v3331_v3 }
 0x2c5   :  { %3158 = vmatpush3.bf16.msra.mxu1 %v3575_v58 }
 0x2c6   :  { %3159 = vmatprep.subr.bf16.mxu1 %v3331_v3 }
 0x2c9   :  { %3161 = vmatpush3.bf16.msra.mxu1 %v3580_v59 }
 0x2ca   :  { %3162 = vmatprep.subr.bf16.mxu1 %v3331_v3 }
 0x2cd   :  { %3164 = vmatpush3.bf16.msra.mxu1 %v3584_v27 }
 0x2ce   :  { %3165 = vmatprep.subr.bf16.mxu1 %v3331_v3 }
 0x2d0   :  { %2801 = vmatmul.mubr.f32.vlgmr.msra.gmra.mrb[2].mxu1 %v3764_v47 }
 0x2d1   :  { %3167 = vmatpush3.bf16.msra.mxu1 %v3590_v28  ;;  %2835 = vmatprep.mubr.msk.f32.mxu1 %vm3332_vm0, %v3333_v8 }
 0x2d2   :  { %3168 = vmatprep.subr.bf16.mxu1 %v3331_v3 }
 0x2d5   :  { %3170 = vmatpush3.bf16.msra.mxu1 %v3597_v11 }
 0x2d6   :  { %3171 = vmatprep.subr.bf16.mxu1 %v3331_v3 }
 0x2d9   :  { %3173 = vmatpush3.bf16.msra.mxu1 %v3605_v30 }
 0x2da   :  { %3174 = vmatprep.subr.bf16.mxu1 %v3331_v3 }
 0x2dd   :  { %3176 = vmatpush3.bf16.msra.mxu1 %v3611_v36 }
 0x2de   :  { %3177 = vmatprep.subr.bf16.mxu1 %v3331_v3 }
 0x2e1   :  { %3179 = vmatpush3.bf16.msra.mxu1 %v3617_v45 }
 0x2e2   :  { %3180 = vmatprep.subr.bf16.mxu1 %v3331_v3 }
 0x2e5   :  { %3182 = vmatpush3.bf16.msra.mxu1 %v3623_v48 }
 0x2e6   :  { %3183 = vmatprep.subr.bf16.mxu1 %v3331_v3 }
 0x2e9   :  { %3185 = vmatpush3.bf16.msra.mxu1 %v3629_v49 }
 0x2ea   :  { %3186 = vmatprep.subr.bf16.mxu1 %v3331_v3 }
 0x2ed   :  { %3188 = vmatpush3.bf16.msra.mxu1 %v3635_v56 }
 0x2ee   :  { %3189 = vmatprep.subr.bf16.mxu1 %v3331_v3 }
 0x2f0   :  { %2836 = vmatmul.mubr.f32.vlgmr.msra.gmra.mrb[2].mxu1 %v1220_v21 }
 0x2f1   :  { %3191 = vmatpush3.bf16.msra.mxu1 %v3394_v12  ;;  %2870 = vmatprep.mubr.msk.f32.mxu1 %vm3332_vm0, %v3333_v8 }
 0x2f2   :  { %3192 = vmatprep.subr.bf16.mxu1 %v3331_v3 }
 0x2f5   :  { %3194 = vmatpush3.bf16.msra.mxu1 %v3397_v13 }
 0x2f6   :  { %3195 = vmatprep.subr.bf16.mxu1 %v3331_v3 }
 0x2f9   :  { %3197 = vmatpush3.bf16.msra.mxu1 %v3413_v20 }
 0x2fa   :  { %3198 = vmatprep.subr.bf16.mxu1 %v3331_v3 }
 0x2fd   :  { %3200 = vmatpush3.bf16.msra.mxu1 %v3439_v31 }
 0x2fe   :  { %3201 = vmatprep.subr.bf16.mxu1 %v3331_v3 }
 0x301   :  { %3203 = vmatpush3.bf16.msra.mxu1 %v3457_v46 }
 0x302   :  { %3204 = vmatprep.subr.bf16.mxu1 %v3331_v3 }
 0x305   :  { %3206 = vmatpush3.bf16.msra.mxu1 %v3469_v51 }
 0x306   :  { %3207 = vmatprep.subr.bf16.mxu1 %v3331_v3 }
 0x309   :  { %3209 = vmatpush3.bf16.msra.mxu1 %v3471_v52 }
 0x30a   :  { %3210 = vmatprep.subr.bf16.mxu1 %v3331_v3 }
 0x30d   :  { %3212 = vmatpush3.bf16.msra.mxu1 %v3473_v53 }
 0x30e   :  { %3213 = vmatprep.subr.bf16.mxu1 %v3331_v3 }
 0x310   :  { %2871 = vmatmul.mubr.f32.vlgmr.msra.gmra.mrb[2].mxu1 %v1221_v54 }
 0x311   :  { %3215 = vmatpush3.bf16.msra.mxu1 %v3523_v29  ;;  %2905 = vmatprep.mubr.msk.f32.mxu1 %vm3332_vm0, %v3333_v8 }
 0x312   :  { %3216 = vmatprep.subr.bf16.mxu1 %v3331_v3 }
 0x315   :  { %3218 = vmatpush3.bf16.msra.mxu1 %v3525_v32 }
 0x316   :  { %3219 = vmatprep.subr.bf16.mxu1 %v3331_v3 }
 0x319   :  { %3221 = vmatpush3.bf16.msra.mxu1 %v3528_v33 }
 0x31a   :  { %3222 = vmatprep.subr.bf16.mxu1 %v3331_v3 }
 0x31d   :  { %3224 = vmatpush3.bf16.msra.mxu1 %v3530_v34 }
 0x31e   :  { %3225 = vmatprep.subr.bf16.mxu1 %v3331_v3 }
 0x321   :  { %3227 = vmatpush3.bf16.msra.mxu1 %v3532_v35 }
 0x322   :  { %3228 = vmatprep.subr.bf16.mxu1 %v3331_v3 }
 0x325   :  { %3230 = vmatpush3.bf16.msra.mxu1 %v3534_v38  ;;  %v2264_v38 = vld [vmem:[%s3901_s3] ss:$0 sm:$0xff] }
 0x326   :  { %3231 = vmatprep.subr.bf16.mxu1 %v3331_v3 }
 0x329   :  { %3233 = vmatpush3.bf16.msra.mxu1 %v3537_v39 }
 0x32a   :  { %3234 = vmatprep.subr.bf16.mxu1 %v3331_v3 }
 0x32d   :  { %3236 = vmatpush3.bf16.msra.mxu1 %v3539_v40 }
 0x32e   :  { %3237 = vmatprep.subr.bf16.mxu1 %v3331_v3 }
 0x330   :  { %2906 = vmatmul.mubr.f32.vlgmr.msra.gmra.mrb[2].mxu1 %v3764_v47 }
 0x331   :  { %3239 = vmatpush3.bf16.msra.mxu1 %v3394_v12  ;;  %2940 = vmatprep.mubr.msk.f32.mxu1 %vm3332_vm0, %v3333_v8 }
 0x332   :  { %3240 = vmatprep.subr.bf16.mxu1 %v3331_v3 }
 0x335   :  { %3242 = vmatpush3.bf16.msra.mxu1 %v3397_v13 }
 0x336   :  { %3243 = vmatprep.subr.bf16.mxu1 %v3331_v3 }
 0x339   :  { %3245 = vmatpush3.bf16.msra.mxu1 %v3413_v20 }
 0x33a   :  { %3246 = vmatprep.subr.bf16.mxu1 %v3331_v3 }
 0x33d   :  { %3248 = vmatpush3.bf16.msra.mxu1 %v3439_v31 }
 0x33e   :  { %3249 = vmatprep.subr.bf16.mxu1 %v3331_v3 }
 0x341   :  { %3251 = vmatpush3.bf16.msra.mxu1 %v3457_v46 }
 0x342   :  { %3252 = vmatprep.subr.bf16.mxu1 %v3331_v3 }
 0x345   :  { %3254 = vmatpush3.bf16.msra.mxu1 %v3469_v51 }
 0x346   :  { %3255 = vmatprep.subr.bf16.mxu1 %v3331_v3 }
 0x349   :  { %3257 = vmatpush3.bf16.msra.mxu1 %v3471_v52  ;;  %v2263_v52 = vld [vmem:[%s3900_s2] ss:$0 sm:$0xff] }
 0x34a   :  { %3258 = vmatprep.subr.bf16.mxu1 %v3331_v3 }
 0x34d   :  { %3260 = vmatpush3.bf16.msra.mxu1 %v3473_v53 }
 0x350   :  { %2941 = vmatmul.mubr.f32.vlgmr.msra.gmra.mrb[2].mxu1 %v3764_v47 }
 0x423   :  { %v1775_v12 = vpop.f32.mrb[2].mxu1 }
 0x424   :  { %v1779_v13 = vmul.f32 0.03125, %v1775_v12  ;;  %v2942_v20 = vpop.f32.mrb[3].mxu1 }
 0x426   :  { %v1780_v25 = vadd.f32 1e-05, %v1779_v13 }
 0x428   :  { %3305 = vrsqrt.f32 %v1780_v25 }
 0x432   :  { %v3306_v31 = vpop.eup %3305 }
 0x433   :  { %v1783_v46 = vsel %vm686_vm1, %v3306_v31, 0 }
 0x434   :  { %v1851_v29 = vand.u32 4294901760, %v1783_v46 }
 0x436   :  { %v1852_v51 = vsub.f32 %v1783_v46, %v1851_v29 }
 0x438   :  { %v1853_v32 = vand.u32 4294901760, %v1852_v51 }
 0x43a   :  { %v1854_v33 = vsub.f32 %v1852_v51, %v1853_v32 }
 0x43c   :  { %v1855_v34 = vand.u32 4294901760, %v1854_v33 }
 0x43e   :  { %2946 = vmatmul.mubr.f32.vlgmr.msra.gmra.mrb[2].mxu0 %v1855_v34 }
 0x43f   :  { %2949 = vmatpush3.msra.mxu0 %v3719_v14  ;;  %2950 = vmatprep.mubr.msk.f32.mxu0 %vm3332_vm0, %v3333_v8 }
 0x440   :  { %2953 = vmatprep.subr.mxu0 %v3333_v8 }
 0x446   :  { %2951 = vmatmul.mubr.f32.vlgmr.msra.gmra.mrb[2].mxu0 %v1851_v29 }
 0x447   :  { %2954 = vmatpush3.msra.mxu0 %v3711_v61  ;;  %2955 = vmatprep.mubr.msk.f32.mxu0 %vm3332_vm0, %v3333_v8 }
 0x448   :  { %2958 = vmatprep.subr.mxu0 %v3333_v8 }
 0x44e   :  { %2956 = vmatmul.mubr.f32.vlgmr.msra.gmra.mrb[2].mxu0 %v1852_v51 }
 0x44f   :  { %2959 = vmatpush3.msra.mxu0 %v3704_v60  ;;  %2960 = vmatprep.mubr.msk.f32.mxu0 %vm3332_vm0, %v3333_v8 }
 0x450   :  { %2963 = vmatprep.subr.mxu0 %v3333_v8 }
 0x456   :  { %2961 = vmatmul.mubr.f32.vlgmr.msra.gmra.mrb[2].mxu0 %v1853_v32 }
 0x457   :  { %2964 = vmatpush3.msra.mxu0 %v3715_v1  ;;  %2965 = vmatprep.mubr.msk.f32.mxu0 %vm3332_vm0, %v3333_v8 }
 0x458   :  { %2968 = vmatprep.subr.mxu0 %v3333_v8 }
 0x45e   :  { %2966 = vmatmul.mubr.f32.vlgmr.msra.gmra.mrb[2].mxu0 %v1851_v29 }
 0x45f   :  { %2969 = vmatpush3.msra.mxu0 %v3704_v60  ;;  %2970 = vmatprep.mubr.msk.f32.mxu0 %vm3332_vm0, %v3333_v8 }
 0x466   :  { %2971 = vmatmul.mubr.f32.vlgmr.msra.gmra.mrb[2].mxu0 %v1851_v29 }
 0x539   :  { %v2227_v3 = vpop.f32.mrb[2].mxu0 }
 0x53a   :  { %v2231_v53 = vmul.f32 %v2227_v3, %v3760_v41  ;;  %v2972_v35 = vpop.f32.mrb[3].mxu0 }
 0x53c   :  { %v2239_v39 = vmul.f32 %v2263_v52, %v2231_v53 }
 0x53e   :  { %v2247_v40 = vadd.f32 %v2264_v38, %v2239_v39 }
 0x540   :  { %2248 = vst [vmem:[#allocation2] sm:$0xf] %v2247_v40 }
 0x541   :  { %3318 = shalt.err (!%p3315_p4)
}
 0x542   :  { %s3319_s15 = scalar_lea.hbm %s3904_s6, 64 }
 0x543   :  { %p3320_p5 = scmp.ne.s32.totalorder %s3904_s6, %s3319_s15  ;;  %p3323_p6 = scmp.lt.u32.totalorder %s3319_s15, %s3904_s6 }
 0x545   :  { %p3325_p7 = pnand %p3323_p6, %p3320_p5 }
 0x547   :  { %3328 = shalt.err (!%p3325_p7)
}
 0x548   :  { %2258 = dma.vmem_to_hbm [thread:$0]  %s2256_s12, 64, %s3904_s6, [#allocation3]  }
 0x549   :  { %3329 = dma.done.wait [#allocation3], 64  }
 0x54a   :  { %3330 = vsyncadd [#allocation3], 4294967232 }
 0x54b   :  { %2262 = vsyncpa [#allocation3], 1 }

</bundles_post_ra>
